<compile_context>
chip_gen: v5e
topology: v5e:2x2
jax: 0.10.0
libtpu: 0.0.40
codegen_flags: <defaults>
</compile_context>

<pallas_src>
import functools

import jax
import jax.numpy as jnp
from jax import lax
from jax.experimental import pallas as pl
from jax.experimental.pallas import tpu as pltpu


def _round_up(v, m):
    return (v + m - 1) // m * m


def _fused_encoder_kernel(x_ref, w1_ref, b1_ref, w2_ref, b2_ref, mask_ref,
                          o_ref, y1p_ref, *, Hps, Wps, Cout, taps1,
                          negative_slope):
    """Fused conv1(k4,s2,p1) -> conv2(k3,s1,p1) -> LeakyReLU for one image.

    x_ref   : (1, 4*Cin_p, Hps*Wps + Wps + 1)  bf16  stride-2 phase planes,
              channel order (dh, dw, cin), flattened (Hps, Wps) grid + zero tail
    w1_ref  : (Cout_p, 16*Cin_p)  bf16   rows = cout, cols = (ph, pw, dh, dw, cin)
    b1_ref  : (Cout_p, 1)         f32
    w2_ref  : (Cout_p, 9*Cout_p)  bf16   rows = cout, cols = (kh, kw, cin)
    b2_ref  : (Cout_p, 1)         f32
    mask_ref: (1, Hps*Wps)        f32    1.0 on the valid (Ho, Wo) region
    o_ref   : (1, Cout, Ho*Wo)           flattened NCHW output
    y1p_ref : (Cout_p, Hps*Wps + 2*(Wps+1)) f32 VMEM scratch (halo-padded y1)
    """
    P = Hps * Wps
    Ho, Wo = Hps - 1, Wps - 1
    halo = Wps + 1

    # ---- conv1: gather the 4 tap windows as lane-shifted slices of the phase
    #      planes, stack along sublanes, one bf16 MXU matmul (K = 16*Cin_p).
    xall = x_ref[0]                                          # (4*Cin_p, P+halo)
    xstack = jnp.concatenate([xall[:, off:off + P] for off in taps1], axis=0)
    y1 = jnp.dot(w1_ref[...], xstack, preferred_element_type=jnp.float32)
    # bias, then zero the invalid (row Hps-1 / col Wps-1) border of the phase
    # grid: those lanes double as conv2's zero padding.
    y1 = (y1 + b1_ref[...]) * mask_ref[...]                  # (Cout_p, P) f32

    # ---- intermediate stays in VMEM (no HBM round trip), with a zeroed halo
    #      so conv2 taps can be read as plain shifted slices.
    y1p_ref[...] = jnp.zeros_like(y1p_ref)
    y1p_ref[:, halo:halo + P] = y1

    # ---- conv2: 9 shifted slices stacked along sublanes, one bf16 MXU matmul
    #      (K = 9*Cout_p), then bias + LeakyReLU (VPU).
    pieces = []
    for kh in range(3):
        for kw in range(3):
            off = (kh - 1) * Wps + (kw - 1)
            pieces.append(y1p_ref[:, halo + off:halo + off + P])
    ystack = jnp.concatenate(pieces, axis=0).astype(jnp.bfloat16)
    y2 = jnp.dot(w2_ref[...], ystack, preferred_element_type=jnp.float32)
    y2 = y2 + b2_ref[...]
    y2 = jnp.where(y2 >= 0, y2, negative_slope * y2)         # LeakyReLU(0.01)

    # ---- compact the (Hps, Wps) compute grid onto dense (Ho*Wo) output lanes
    #      (NCHW-compatible flat layout) with simple row-wise stores.
    for oh in range(Ho):
        o_ref[0, :, oh * Wo:(oh + 1) * Wo] = (
            y2[:Cout, oh * Wps:oh * Wps + Wo].astype(o_ref.dtype))


def conv_vae_encoder(x_nchw, params, *, negative_slope=0.01):
    """Pallas implementation of ConvVAEEncoder.forward (batch_norm=False)."""
    N, Cin, H, W = x_nchw.shape
    KH = KW = 4
    s = 2
    assert H % 2 == 0 and W % 2 == 0, "even spatial dims required (k4,s2,p1)"

    w1, b1, w2, b2 = params["w1"], params["b1"], params["w2"], params["b2"]
    Cout = w1.shape[-1]
    Cin_p = _round_up(Cin, 8)          # 8-sublane aligned channel padding
    Cout_p = _round_up(Cout, 8)

    Hp, Wp = H + 2, W + 2              # conv1 pad = 1
    Hps, Wps = Hp // s, Wp // s        # stride-2 phase grid
    Ho, Wo = Hps - 1, Wps - 1          # output spatial (= H//2, W//2)
    P = Hps * Wps
    halo = Wps + 1

    # --- input prep (single wrapper pass, no NCHW transpose needed):
    #     zero-pad, stride-2 phase split (dh, dw), channel-major, flatten the
    #     (Hps, Wps) grid onto lanes, append a zero tail for tap slices, bf16.
    xp = jnp.pad(x_nchw, ((0, 0), (0, Cin_p - Cin), (1, 1), (1, 1)))
    xph = xp.reshape(N, Cin_p, Hps, s, Wps, s).transpose(0, 3, 5, 1, 2, 4)
    xph = xph.reshape(N, s * s * Cin_p, P)
    xph = jnp.pad(xph, ((0, 0), (0, 0), (0, halo))).astype(jnp.bfloat16)

    # --- weight slabs: one matmul per conv (bf16 operands, f32 accumulate).
    # conv1 slab columns ordered (ph, pw, dh, dw, cin), where kh = 2*ph + dh.
    w1p = jnp.pad(w1, ((0, 0), (0, 0), (0, Cin_p - Cin), (0, Cout_p - Cout)))
    K1 = (KH // s) * (KW // s) * s * s * Cin_p
    w1slab = (w1p.reshape(KH // s, s, KW // s, s, Cin_p, Cout_p)
              .transpose(5, 0, 2, 1, 3, 4)
              .reshape(Cout_p, K1)
              .astype(jnp.bfloat16))
    # conv2 slab columns ordered (kh, kw, cin).
    w2p = jnp.pad(w2, ((0, 0), (0, 0), (0, Cout_p - Cout), (0, Cout_p - Cout)))
    w2slab = (w2p.transpose(3, 0, 1, 2).reshape(Cout_p, 9 * Cout_p)
              .astype(jnp.bfloat16))

    b1p = jnp.pad(b1, (0, Cout_p - Cout)).reshape(Cout_p, 1).astype(jnp.float32)
    b2p = jnp.pad(b2, (0, Cout_p - Cout)).reshape(Cout_p, 1).astype(jnp.float32)

    # valid-region mask on the (Hps, Wps) compute grid.
    q = jnp.arange(P, dtype=jnp.int32)
    mask = (((q // Wps) < Ho) & ((q % Wps) < Wo)).astype(jnp.float32)
    mask = mask.reshape(1, P)

    taps1 = tuple(ph * Wps + pw
                  for ph in range(KH // s) for pw in range(KW // s))

    kernel = functools.partial(
        _fused_encoder_kernel, Hps=Hps, Wps=Wps, Cout=Cout,
        taps1=taps1, negative_slope=negative_slope)

    out_flat = pl.pallas_call(
        kernel,
        out_shape=jax.ShapeDtypeStruct((N, Cout, Ho * Wo), x_nchw.dtype),
        grid=(N,),
        in_specs=[
            pl.BlockSpec((1, s * s * Cin_p, P + halo), lambda n: (n, 0, 0)),
            pl.BlockSpec((Cout_p, K1), lambda n: (0, 0)),
            pl.BlockSpec((Cout_p, 1), lambda n: (0, 0)),
            pl.BlockSpec((Cout_p, 9 * Cout_p), lambda n: (0, 0)),
            pl.BlockSpec((Cout_p, 1), lambda n: (0, 0)),
            pl.BlockSpec((1, P), lambda n: (0, 0)),
        ],
        out_specs=pl.BlockSpec((1, Cout, Ho * Wo), lambda n: (n, 0, 0)),
        scratch_shapes=[pltpu.VMEM((Cout_p, P + 2 * halo), jnp.float32)],
        compiler_params=pltpu.CompilerParams(
            dimension_semantics=("parallel",),
            vmem_limit_bytes=32 * 1024 * 1024),
    )(xph, w1slab, b1p, w2slab, b2p, mask)

    # free reshape: (N, Cout, Ho*Wo) and (N, Cout, Ho, Wo) share NCHW layout.
    return out_flat.reshape(N, Cout, Ho, Wo)


def init_params(key, in_chn, out_chn):
    """Deterministic synthetic parameters (shapes match nn.Conv2d in __init__)."""
    k1, k2, k3, k4 = jax.random.split(key, 4)
    fan1 = in_chn * 4 * 4
    fan2 = out_chn * 3 * 3
    return dict(
        w1=jax.random.normal(k1, (4, 4, in_chn, out_chn), jnp.float32) / jnp.sqrt(fan1),
        b1=jax.random.normal(k2, (out_chn,), jnp.float32) * 0.01,
        w2=jax.random.normal(k3, (3, 3, out_chn, out_chn), jnp.float32) / jnp.sqrt(fan2),
        b2=jax.random.normal(k4, (out_chn,), jnp.float32) * 0.01,
    )


def reference(x_nchw, params):
    """Plain-JAX reference (mirrors the PyTorch forward) for verification."""
    dn = ("NCHW", "HWIO", "NCHW")
    y = lax.conv_general_dilated(x_nchw, params["w1"], (2, 2), ((1, 1), (1, 1)),
                                 dimension_numbers=dn,
                                 precision=lax.Precision.HIGHEST)
    y = y + params["b1"].reshape(1, -1, 1, 1)
    y = lax.conv_general_dilated(y, params["w2"], (1, 1), ((1, 1), (1, 1)),
                                 dimension_numbers=dn,
                                 precision=lax.Precision.HIGHEST)
    y = y + params["b2"].reshape(1, -1, 1, 1)
    return jnp.where(y >= 0, y, 0.01 * y)


if __name__ == "__main__":
    import numpy as np

    key = jax.random.PRNGKey(0)
    kx, kp = jax.random.split(key)

    in_chn, out_chn = 4, 8
    x = jax.random.normal(kx, (2, in_chn, 16, 16), jnp.float32)   # NCHW, like torch
    params = init_params(kp, in_chn, out_chn)

    fwd = jax.jit(conv_vae_encoder)
    out = jax.block_until_ready(fwd(x, params))
    assert out.shape == (2, out_chn, 8, 8), out.shape

    ref = jax.block_until_ready(reference(x, params))
    # bf16 MXU operands (f32 accumulation) -> slightly looser tolerance,
    # as sanctioned by the review's correctness note.
    np.testing.assert_allclose(np.asarray(out), np.asarray(ref),
                               rtol=3e-2, atol=3e-2)

    print("KERNEL_OK")
</pallas_src>

<mosaic_0001>
module attributes {stable_mosaic.version = 11 : i64} {
  func.func @_fused_encoder_kernel(%arg0: i32, %arg1: memref<1x32x91xbf16, #tpu.memory_space<vmem>>, %arg2: memref<8x128xbf16, #tpu.memory_space<vmem>>, %arg3: memref<8x1xf32, #tpu.memory_space<vmem>>, %arg4: memref<8x72xbf16, #tpu.memory_space<vmem>>, %arg5: memref<8x1xf32, #tpu.memory_space<vmem>>, %arg6: memref<1x81xf32, #tpu.memory_space<vmem>>, %arg7: memref<1x8x64xf32, #tpu.memory_space<vmem>>, %arg8: memref<8x101xf32, #tpu.memory_space<vmem>>) attributes {dimension_semantics = [#tpu.dimension_semantics<parallel>], iteration_bounds = array<i64: 2>, scalar_prefetch = 0 : i64, scratch_operands = 1 : i64, tpu.core_type = #tpu.core_type<tc>, window_params = [{transform_indices = @transform_0, window_bounds = array<i64: 1, 32, 91>}, {pipeline_mode = #tpu.pipeline_mode<synchronous>, transform_indices = @transform_1, window_bounds = array<i64: 8, 128>}, {pipeline_mode = #tpu.pipeline_mode<synchronous>, transform_indices = @transform_2, window_bounds = array<i64: 8, 1>}, {pipeline_mode = #tpu.pipeline_mode<synchronous>, transform_indices = @transform_3, window_bounds = array<i64: 8, 72>}, {pipeline_mode = #tpu.pipeline_mode<synchronous>, transform_indices = @transform_4, window_bounds = array<i64: 8, 1>}, {pipeline_mode = #tpu.pipeline_mode<synchronous>, transform_indices = @transform_5, window_bounds = array<i64: 1, 81>}, {transform_indices = @transform_6, window_bounds = array<i64: 1, 8, 64>}]} {
    %c0 = arith.constant 0 : index
    %c0_0 = arith.constant 0 : index
    %c0_1 = arith.constant 0 : index
    %0 = vector.load %arg1[%c0, %c0_0, %c0_1] : memref<1x32x91xbf16, #tpu.memory_space<vmem>>, vector<1x32x91xbf16>
    %1 = vector.shape_cast %0 : vector<1x32x91xbf16> to vector<32x91xbf16>
    %2 = vector.extract_strided_slice %1 {offsets = [0, 0], sizes = [32, 81], strides = [1, 1]} : vector<32x91xbf16> to vector<32x81xbf16>
    %3 = vector.extract_strided_slice %1 {offsets = [0, 1], sizes = [32, 81], strides = [1, 1]} : vector<32x91xbf16> to vector<32x81xbf16>
    %4 = vector.extract_strided_slice %1 {offsets = [0, 9], sizes = [32, 81], strides = [1, 1]} : vector<32x91xbf16> to vector<32x81xbf16>
    %5 = vector.extract_strided_slice %1 {offsets = [0, 10], sizes = [32, 81], strides = [1, 1]} : vector<32x91xbf16> to vector<32x81xbf16>
    %6 = tpu.concatenate %2, %3, %4, %5 in 0 : vector<32x81xbf16>, vector<32x81xbf16>, vector<32x81xbf16>, vector<32x81xbf16> -> vector<128x81xbf16>
    %c0_2 = arith.constant 0 : index
    %c0_3 = arith.constant 0 : index
    %7 = vector.load %arg2[%c0_2, %c0_3] : memref<8x128xbf16, #tpu.memory_space<vmem>>, vector<8x128xbf16>
    %cst = arith.constant dense<0.000000e+00> : vector<8x81xf32>
    %8 = tpu.matmul %7, %6, %cst {dimension_numbers = #tpu.dot_dimension_numbers<[1], [0], [0], [1], [0, 0, 1, 1], [], []>} : vector<8x128xbf16>, vector<128x81xbf16>, vector<8x81xf32> -> vector<8x81xf32>
    %c0_4 = arith.constant 0 : index
    %c0_5 = arith.constant 0 : index
    %9 = vector.load %arg3[%c0_4, %c0_5] : memref<8x1xf32, #tpu.memory_space<vmem>>, vector<8x1xf32>
    %10 = vector.broadcast %9 : vector<8x1xf32> to vector<8x81xf32>
    %11 = arith.addf %8, %10 : vector<8x81xf32>
    %c0_6 = arith.constant 0 : index
    %c0_7 = arith.constant 0 : index
    %12 = vector.load %arg6[%c0_6, %c0_7] : memref<1x81xf32, #tpu.memory_space<vmem>>, vector<1x81xf32>
    %13 = vector.broadcast %12 : vector<1x81xf32> to vector<8x81xf32>
    %14 = arith.mulf %11, %13 : vector<8x81xf32>
    %cst_8 = arith.constant 0.000000e+00 : f32
    %15 = vector.broadcast %cst_8 : f32 to vector<8x101xf32>
    %c0_9 = arith.constant 0 : index
    %c0_10 = arith.constant 0 : index
    %16 = vector.load %arg8[%c0_9, %c0_10] : memref<8x101xf32, #tpu.memory_space<vmem>>, vector<8x101xf32>
    tpu.vector_store %arg8[%c0_9, %c0_10], %15 {strides = array<i32>} : memref<8x101xf32, #tpu.memory_space<vmem>>, vector<8x101xf32>,
    %c0_11 = arith.constant 0 : index
    %c10 = arith.constant 10 : index
    %17 = vector.load %arg8[%c0_11, %c10] : memref<8x101xf32, #tpu.memory_space<vmem>>, vector<8x81xf32>
    tpu.vector_store %arg8[%c0_11, %c10], %14 {strides = array<i32>} : memref<8x101xf32, #tpu.memory_space<vmem>>, vector<8x81xf32>,
    %c0_12 = arith.constant 0 : index
    %c0_13 = arith.constant 0 : index
    %18 = vector.load %arg8[%c0_12, %c0_13] : memref<8x101xf32, #tpu.memory_space<vmem>>, vector<8x81xf32>
    %c0_14 = arith.constant 0 : index
    %c1 = arith.constant 1 : index
    %19 = vector.load %arg8[%c0_14, %c1] : memref<8x101xf32, #tpu.memory_space<vmem>>, vector<8x81xf32>
    %c0_15 = arith.constant 0 : index
    %c2 = arith.constant 2 : index
    %20 = vector.load %arg8[%c0_15, %c2] : memref<8x101xf32, #tpu.memory_space<vmem>>, vector<8x81xf32>
    %c0_16 = arith.constant 0 : index
    %c9 = arith.constant 9 : index
    %21 = vector.load %arg8[%c0_16, %c9] : memref<8x101xf32, #tpu.memory_space<vmem>>, vector<8x81xf32>
    %c0_17 = arith.constant 0 : index
    %c10_18 = arith.constant 10 : index
    %22 = vector.load %arg8[%c0_17, %c10_18] : memref<8x101xf32, #tpu.memory_space<vmem>>, vector<8x81xf32>
    %c0_19 = arith.constant 0 : index
    %c11 = arith.constant 11 : index
    %23 = vector.load %arg8[%c0_19, %c11] : memref<8x101xf32, #tpu.memory_space<vmem>>, vector<8x81xf32>
    %c0_20 = arith.constant 0 : index
    %c18 = arith.constant 18 : index
    %24 = vector.load %arg8[%c0_20, %c18] : memref<8x101xf32, #tpu.memory_space<vmem>>, vector<8x81xf32>
    %c0_21 = arith.constant 0 : index
    %c19 = arith.constant 19 : index
    %25 = vector.load %arg8[%c0_21, %c19] : memref<8x101xf32, #tpu.memory_space<vmem>>, vector<8x81xf32>
    %c0_22 = arith.constant 0 : index
    %c20 = arith.constant 20 : index
    %26 = vector.load %arg8[%c0_22, %c20] : memref<8x101xf32, #tpu.memory_space<vmem>>, vector<8x81xf32>
    %27 = tpu.concatenate %18, %19, %20, %21, %22, %23, %24, %25, %26 in 0 : vector<8x81xf32>, vector<8x81xf32>, vector<8x81xf32>, vector<8x81xf32>, vector<8x81xf32>, vector<8x81xf32>, vector<8x81xf32>, vector<8x81xf32>, vector<8x81xf32> -> vector<72x81xf32>
    %28 = arith.truncf %27 : vector<72x81xf32> to vector<72x81xbf16>
    %c0_23 = arith.constant 0 : index
    %c0_24 = arith.constant 0 : index
    %29 = vector.load %arg4[%c0_23, %c0_24] : memref<8x72xbf16, #tpu.memory_space<vmem>>, vector<8x72xbf16>
    %cst_25 = arith.constant dense<0.000000e+00> : vector<8x81xf32>
    %30 = tpu.matmul %29, %28, %cst_25 {dimension_numbers = #tpu.dot_dimension_numbers<[1], [0], [0], [1], [0, 0, 1, 1], [], []>} : vector<8x72xbf16>, vector<72x81xbf16>, vector<8x81xf32> -> vector<8x81xf32>
    %c0_26 = arith.constant 0 : index
    %c0_27 = arith.constant 0 : index
    %31 = vector.load %arg5[%c0_26, %c0_27] : memref<8x1xf32, #tpu.memory_space<vmem>>, vector<8x1xf32>
    %32 = vector.broadcast %31 : vector<8x1xf32> to vector<8x81xf32>
    %33 = arith.addf %30, %32 : vector<8x81xf32>
    %cst_28 = arith.constant 0.000000e+00 : f32
    %34 = vector.broadcast %cst_28 : f32 to vector<8x81xf32>
    %35 = arith.cmpf oge, %33, %34 : vector<8x81xf32>
    %cst_29 = arith.constant 0.00999999977 : f32
    %36 = vector.broadcast %cst_29 : f32 to vector<8x81xf32>
    %37 = arith.mulf %36, %33 : vector<8x81xf32>
    %38 = arith.select %35, %33, %37 : vector<8x81xi1>, vector<8x81xf32>
    %39 = vector.extract_strided_slice %38 {offsets = [0, 0], sizes = [8, 8], strides = [1, 1]} : vector<8x81xf32> to vector<8x8xf32>
    %c0_30 = arith.constant 0 : index
    %c0_31 = arith.constant 0 : index
    %c0_32 = arith.constant 0 : index
    %40 = vector.load %arg7[%c0_30, %c0_31, %c0_32] : memref<1x8x64xf32, #tpu.memory_space<vmem>>, vector<1x8x8xf32>
    %41 = vector.shape_cast %40 : vector<1x8x8xf32> to vector<8x8xf32>
    %42 = vector.shape_cast %39 : vector<8x8xf32> to vector<1x8x8xf32>
    tpu.vector_store %arg7[%c0_30, %c0_31, %c0_32], %42 {strides = array<i32>} : memref<1x8x64xf32, #tpu.memory_space<vmem>>, vector<1x8x8xf32>,
    %43 = vector.extract_strided_slice %38 {offsets = [0, 9], sizes = [8, 8], strides = [1, 1]} : vector<8x81xf32> to vector<8x8xf32>
    %c0_33 = arith.constant 0 : index
    %c0_34 = arith.constant 0 : index
    %c8 = arith.constant 8 : index
    %44 = vector.load %arg7[%c0_33, %c0_34, %c8] : memref<1x8x64xf32, #tpu.memory_space<vmem>>, vector<1x8x8xf32>
    %45 = vector.shape_cast %44 : vector<1x8x8xf32> to vector<8x8xf32>
    %46 = vector.shape_cast %43 : vector<8x8xf32> to vector<1x8x8xf32>
    tpu.vector_store %arg7[%c0_33, %c0_34, %c8], %46 {strides = array<i32>} : memref<1x8x64xf32, #tpu.memory_space<vmem>>, vector<1x8x8xf32>,
    %47 = vector.extract_strided_slice %38 {offsets = [0, 18], sizes = [8, 8], strides = [1, 1]} : vector<8x81xf32> to vector<8x8xf32>
    %c0_35 = arith.constant 0 : index
    %c0_36 = arith.constant 0 : index
    %c16 = arith.constant 16 : index
    %48 = vector.load %arg7[%c0_35, %c0_36, %c16] : memref<1x8x64xf32, #tpu.memory_space<vmem>>, vector<1x8x8xf32>
    %49 = vector.shape_cast %48 : vector<1x8x8xf32> to vector<8x8xf32>
    %50 = vector.shape_cast %47 : vector<8x8xf32> to vector<1x8x8xf32>
    tpu.vector_store %arg7[%c0_35, %c0_36, %c16], %50 {strides = array<i32>} : memref<1x8x64xf32, #tpu.memory_space<vmem>>, vector<1x8x8xf32>,
    %51 = vector.extract_strided_slice %38 {offsets = [0, 27], sizes = [8, 8], strides = [1, 1]} : vector<8x81xf32> to vector<8x8xf32>
    %c0_37 = arith.constant 0 : index
    %c0_38 = arith.constant 0 : index
    %c24 = arith.constant 24 : index
    %52 = vector.load %arg7[%c0_37, %c0_38, %c24] : memref<1x8x64xf32, #tpu.memory_space<vmem>>, vector<1x8x8xf32>
    %53 = vector.shape_cast %52 : vector<1x8x8xf32> to vector<8x8xf32>
    %54 = vector.shape_cast %51 : vector<8x8xf32> to vector<1x8x8xf32>
    tpu.vector_store %arg7[%c0_37, %c0_38, %c24], %54 {strides = array<i32>} : memref<1x8x64xf32, #tpu.memory_space<vmem>>, vector<1x8x8xf32>,
    %55 = vector.extract_strided_slice %38 {offsets = [0, 36], sizes = [8, 8], strides = [1, 1]} : vector<8x81xf32> to vector<8x8xf32>
    %c0_39 = arith.constant 0 : index
    %c0_40 = arith.constant 0 : index
    %c32 = arith.constant 32 : index
    %56 = vector.load %arg7[%c0_39, %c0_40, %c32] : memref<1x8x64xf32, #tpu.memory_space<vmem>>, vector<1x8x8xf32>
    %57 = vector.shape_cast %56 : vector<1x8x8xf32> to vector<8x8xf32>
    %58 = vector.shape_cast %55 : vector<8x8xf32> to vector<1x8x8xf32>
    tpu.vector_store %arg7[%c0_39, %c0_40, %c32], %58 {strides = array<i32>} : memref<1x8x64xf32, #tpu.memory_space<vmem>>, vector<1x8x8xf32>,
    %59 = vector.extract_strided_slice %38 {offsets = [0, 45], sizes = [8, 8], strides = [1, 1]} : vector<8x81xf32> to vector<8x8xf32>
    %c0_41 = arith.constant 0 : index
    %c0_42 = arith.constant 0 : index
    %c40 = arith.constant 40 : index
    %60 = vector.load %arg7[%c0_41, %c0_42, %c40] : memref<1x8x64xf32, #tpu.memory_space<vmem>>, vector<1x8x8xf32>
    %61 = vector.shape_cast %60 : vector<1x8x8xf32> to vector<8x8xf32>
    %62 = vector.shape_cast %59 : vector<8x8xf32> to vector<1x8x8xf32>
    tpu.vector_store %arg7[%c0_41, %c0_42, %c40], %62 {strides = array<i32>} : memref<1x8x64xf32, #tpu.memory_space<vmem>>, vector<1x8x8xf32>,
    %63 = vector.extract_strided_slice %38 {offsets = [0, 54], sizes = [8, 8], strides = [1, 1]} : vector<8x81xf32> to vector<8x8xf32>
    %c0_43 = arith.constant 0 : index
    %c0_44 = arith.constant 0 : index
    %c48 = arith.constant 48 : index
    %64 = vector.load %arg7[%c0_43, %c0_44, %c48] : memref<1x8x64xf32, #tpu.memory_space<vmem>>, vector<1x8x8xf32>
    %65 = vector.shape_cast %64 : vector<1x8x8xf32> to vector<8x8xf32>
    %66 = vector.shape_cast %63 : vector<8x8xf32> to vector<1x8x8xf32>
    tpu.vector_store %arg7[%c0_43, %c0_44, %c48], %66 {strides = array<i32>} : memref<1x8x64xf32, #tpu.memory_space<vmem>>, vector<1x8x8xf32>,
    %67 = vector.extract_strided_slice %38 {offsets = [0, 63], sizes = [8, 8], strides = [1, 1]} : vector<8x81xf32> to vector<8x8xf32>
    %c0_45 = arith.constant 0 : index
    %c0_46 = arith.constant 0 : index
    %c56 = arith.constant 56 : index
    %68 = vector.load %arg7[%c0_45, %c0_46, %c56] : memref<1x8x64xf32, #tpu.memory_space<vmem>>, vector<1x8x8xf32>
    %69 = vector.shape_cast %68 : vector<1x8x8xf32> to vector<8x8xf32>
    %70 = vector.shape_cast %67 : vector<8x8xf32> to vector<1x8x8xf32>
    tpu.vector_store %arg7[%c0_45, %c0_46, %c56], %70 {strides = array<i32>} : memref<1x8x64xf32, #tpu.memory_space<vmem>>, vector<1x8x8xf32>,
    return
  }
  func.func @transform_0(%arg0: i32) -> (i32, i32, i32) {
    %c0_i32 = arith.constant 0 : i32
    %c0_i32_0 = arith.constant 0 : i32
    %c0_i32_1 = arith.constant 0 : i32
    return %arg0, %c0_i32, %c0_i32_0 : i32, i32, i32
  }
  func.func @transform_1(%arg0: i32) -> (i32, i32) {
    %c0_i32 = arith.constant 0 : i32
    %c0_i32_0 = arith.constant 0 : i32
    %c0_i32_1 = arith.constant 0 : i32
    return %c0_i32, %c0_i32_0 : i32, i32
  }
  func.func @transform_2(%arg0: i32) -> (i32, i32) {
    %c0_i32 = arith.constant 0 : i32
    %c0_i32_0 = arith.constant 0 : i32
    %c0_i32_1 = arith.constant 0 : i32
    return %c0_i32, %c0_i32_0 : i32, i32
  }
  func.func @transform_3(%arg0: i32) -> (i32, i32) {
    %c0_i32 = arith.constant 0 : i32
    %c0_i32_0 = arith.constant 0 : i32
    %c0_i32_1 = arith.constant 0 : i32
    return %c0_i32, %c0_i32_0 : i32, i32
  }
  func.func @transform_4(%arg0: i32) -> (i32, i32) {
    %c0_i32 = arith.constant 0 : i32
    %c0_i32_0 = arith.constant 0 : i32
    %c0_i32_1 = arith.constant 0 : i32
    return %c0_i32, %c0_i32_0 : i32, i32
  }
  func.func @transform_5(%arg0: i32) -> (i32, i32) {
    %c0_i32 = arith.constant 0 : i32
    %c0_i32_0 = arith.constant 0 : i32
    %c0_i32_1 = arith.constant 0 : i32
    return %c0_i32, %c0_i32_0 : i32, i32
  }
  func.func @transform_6(%arg0: i32) -> (i32, i32, i32) {
    %c0_i32 = arith.constant 0 : i32
    %c0_i32_0 = arith.constant 0 : i32
    %c0_i32_1 = arith.constant 0 : i32
    return %arg0, %c0_i32, %c0_i32_0 : i32, i32, i32
  }
}

</mosaic_0001>

<bundles_post_ra>
// kernel: conv_vae_encoder.1
= control target key start
LH: loop header
LB: loop body
LE: loop exit
PB: predicated region body
PF: predicated region fallthrough
CT: control target
= control target key end

     0   :  { %s579_s21 = smov 0   ;;  %s637_s0 = inlined_call_operand.vmem [shape: bf16[2,32,91], index: 0, kind: input, shape index: {}]   ;;  %s638_s1 = inlined_call_operand.vmem [shape: bf16[8,128], index: 1, kind: input, shape index: {}]   ;;  %s639_s2 = inlined_call_operand.vmem [shape: f32[8,1], index: 2, kind: input, shape index: {}]   ;;  %s640_s3 = inlined_call_operand.vmem [shape: bf16[8,72], index: 3, kind: input, shape index: {}]   ;;  %s641_s4 = inlined_call_operand.vmem [shape: f32[8,1], index: 4, kind: input, shape index: {}]   ;;  %s642_s5 = inlined_call_operand.vmem [shape: f32[1,81], index: 5, kind: input, shape index: {}]   ;;  %s643_s6 = inlined_call_operand.vmem [shape: f32[2,8,64], index: 6, kind: output, shape index: {}]  }
   0x1 LB: > { %s471_s22 = sadd.s32 4294967295, %s526_s21   ;;  %p475_p0 = scmp.ge.s32.totalorder %s526_s21, 1  ;;  %s526_s21 = sphi %s579_s21, %s16_s21  }
   0x2   : > { %p212_p1 = scmp.lt.s32.totalorder %s526_s21, 3 }
   0x4   : > { %p213_p2 = pnand %p475_p0, %p212_p1 }
   0x5   : > { %p241_p3 = scmp.lt.s32.totalorder (!%p213_p2), %s471_s22, 1  ;;  %s528_s27 = smov (!%p213_p2), 118  }
   0x6   : > { %216 = sbr.rel (%p213_p2) target bundleno = 818 (0x332), region = 44  ;;  %s529_s28 = smov (!%p213_p2), 119  }
   0x7   : > { %s530_s29 = smov (!%p213_p2), 127   ;;  %s533_s12 = smov (!%p213_p2), 10  }
   0x8   : > { %s534_s13 = smov (!%p213_p2), 110   ;;  %s535_s14 = smov (!%p213_p2), 108  }
   0x9   : > { %s536_s15 = smov (!%p213_p2), 117   ;;  %s537_s16 = smov (!%p213_p2), 109  }
   0xa   : > { %s538_s17 = smov (!%p213_p2), 126   ;;  %s541_s30 = smov (!%p213_p2), 123  }
   0xb   : > { %s645_s22 = smov (!%p241_p3, %s471_s22), 1  ;;  %v286_v4 = vld [vmem:[%s639_s2] sm:$0xff]  ;;  %v531_v5 = vmov 0   ;;  %vm310_vm0 = vcmask 826368   ;;  %v532_v11 = vmov 0.0   ;;  %vm316_vm1 = vcmask 744528  }
   0xc   : > { %s490_s23 = sshll.u32 %s645_s22, 4  ;;  %517 = vset.pattern.permute.xlu0 %v531_v5  ;;  %518 = vset.pattern.permute.xlu2 %v531_v5  ;;  %v285_v10 = vld [vmem:[%s638_s1] sm:$0xf]  ;;  %311 = vst.msk [vmem:[#allocation2] sm:$0xff] %vm310_vm0, %v532_v11  ;;  %vm360_vm2 = vcmask 1043456   ;;  %vm356_vm3 = vcmask 588800  }
   0xd   : > { %s245_s26 = scalar_lea.vmem %s637_s0, %s490_s23  ;;  %v519_v13 = vld [vmem:[%s642_s5] ss:$0 sm:$0xff]  ;;  %s478_s24 = sshll.u32 %s645_s22, 3  ;;  %vm380_vm5 = vcmask 64512   ;;  %vm386_vm6 = vcmask 130112   ;;  %vm391_vm7 = vcmask 195712  }
   0xe   : > { %v492_v0 = vld [vmem:[%s245_s26 + $0x8] sm:$0xff]  ;;  %v491_v1 = vld [vmem:[%s245_s26] sm:$0xff]  ;;  %s540_s22 = smov 122   ;;  %s542_s7 = smov 124   ;;  %vm396_vm8 = vcmask 261312   ;;  %vm401_vm9 = vcmask 326912  }
   0xf   : > { %281 = vrot.lane.b32.xlu0 %v492_v0, %s528_s27  ;;  %275 = vrot.lane.b32.xlu1 %v492_v0, %s529_s28  ;;  %v350_v23 = vld [vmem:[%s641_s4] sm:$0xff]  ;;  %s543_s8 = smov 121   ;;  %vm406_vm10 = vcmask 392512   ;;  %vm411_vm11 = vcmask 458112   ;;  %vm416_vm12 = vcmask 523712  }
  0x10   : > { %269 = vrot.lane.b32.xlu2 %v492_v0, %s530_s29  ;;  %v349_v35 = vld [vmem:[%s640_s3] sm:$0xf] }
  0x17   : > { %279 = vrot.lane.b32.xlu0 %v491_v1, %s528_s27  ;;  %273 = vrot.lane.b32.xlu1 %v491_v1, %s529_s28 }
  0x18   : > { %267 = vrot.lane.b32.xlu2 %v491_v1, %s530_s29 }
  0x1f   : > { %289 = vperm.xlu0 %517, %v286_v4  }
  0x6a   : > { %v270_v7 = vpop.permute.xlu2 %269 }
  0x72   : > { %v268_v9 = vpop.permute.xlu2 %267 }
  0x81   : > { %v282_v2 = vpop.permute.xlu0 %281  ;;  %v276_v3 = vpop.permute.xlu1 %275 }
  0x82   : > { %292 = vmatpush.bf16.msra.mxu0 %v282_v2 }
  0x89   : > { %v280_v6 = vpop.permute.xlu0 %279  ;;  %v274_v8 = vpop.permute.xlu1 %273 }
  0x8a   : > { %293 = vmatpush.bf16.msra.mxu0 %v280_v6 }
  0x8e   : > { %294 = vmatpush.bf16.msra.mxu0 %v276_v3 }
  0x91   : > { %v290_v12 = vpop.permute.xlu0 %289 }
  0x92   : > { %295 = vmatpush.bf16.msra.mxu0 %v274_v8 }
  0x96   : > { %296 = vmatpush.bf16.msra.mxu0 %v270_v7 }
  0x9a   : > { %297 = vmatpush.bf16.msra.mxu0 %v268_v9 }
  0x9e   : > { %298 = vmatpush.bf16.msra.mxu0 %v492_v0 }
  0xa2   : > { %299 = vmatpush.bf16.msra.mxu0 %v491_v1 }
  0xa5   : > { %300 = vmatmul.bf16.vlgmr.msra.gmra.mxu0 %v285_v10 }
 0x122   : > { %v301_v14 = vpop.f32.mrf.mxu0 }
 0x123   : > { %v302_v15 = vadd.f32 %v301_v14, %v290_v12 }
 0x125   : > { %v309_v16 = vmul.f32 %v519_v13, %v302_v15 }
 0x127   : > { %313 = vrot.lane.b32.xlu1 %v309_v16, %s533_s12 }
 0x12a   : > { %v303_v17 = vpop.f32.mrf.mxu0 }
 0x199   : > { %v314_v18 = vpop.permute.xlu1 %313 }
 0x19a   : > { %317 = vst.msk [vmem:[#allocation2] sm:$0xff] %vm316_vm1, %v314_v18 }
 0x1a1   : > { %v318_v19 = vld [vmem:[#allocation2] sm:$0xff] }
 0x1a2   : > { %329 = vrot.lane.b32.xlu0 %v318_v19, %s528_s27  ;;  %335 = vrot.lane.b32.xlu1 %v318_v19, %s534_s13  ;;  %s622_s27 = scalar_lea.vmem %s643_s6, %s478_s24 }
 0x1a3   : > { %341 = vrot.lane.b32.xlu2 %v318_v19, %s535_s14 }
 0x1aa   : > { %326 = vrot.lane.b32.xlu0 %v318_v19, %s529_s28  ;;  %332 = vrot.lane.b32.xlu1 %v318_v19, %s536_s15  ;;  %s539_s28 = smov 125  }
 0x1ab   : > { %338 = vrot.lane.b32.xlu2 %v318_v19, %s537_s16 }
 0x1b2   : > { %320 = vrot.lane.b32.xlu1 %v318_v19, %s530_s29 }
 0x1b3   : > { %323 = vrot.lane.b32.xlu2 %v318_v19, %s538_s17 }
 0x1bb   : > { %353 = vperm.xlu2 %518, %v350_v23  }
 0x1fd   : > { %v342_v20 = vpop.permute.xlu2 %341 }
 0x1fe   : > { %v348_v21 = vpack.c.bf16 %v342_v20, %v342_v20 }
 0x200   : > { %v362_v22 = vsel %vm360_vm2, %v348_v21, 0 }
 0x201   : > { %367 = vmatpush.bf16.msra.mxu1 %v362_v22 }
 0x205   : > { %v339_v24 = vpop.permute.xlu2 %338 }
 0x20d   : > { %v324_v31 = vpop.permute.xlu2 %323 }
 0x214   : > { %v330_v25 = vpop.permute.xlu0 %329  ;;  %v336_v26 = vpop.permute.xlu1 %335 }
 0x215   : > { %v347_v27 = vpack.c.bf16 %v339_v24, %v336_v26  ;;  %v354_v36 = vpop.permute.xlu2 %353 }
 0x217   : > { %368 = vmatpush.bf16.msra.mxu1 %v347_v27 }
 0x21c   : > { %v333_v28 = vpop.permute.xlu1 %332  ;;  %v327_v30 = vpop.permute.xlu0 %326 }
 0x21d   : > { %v346_v29 = vpack.c.bf16 %v333_v28, %v330_v25  ;;  %v345_v32 = vpack.c.bf16 %v327_v30, %v324_v31 }
 0x21f   : > { %369 = vmatpush.bf16.msra.mxu1 %v346_v29 }
 0x223   : > { %370 = vmatpush.bf16.msra.mxu1 %v345_v32 }
 0x224   : > { %v321_v33 = vpop.permute.xlu1 %320 }
 0x225   : > { %v344_v34 = vpack.c.bf16 %v321_v33, %v318_v19 }
 0x227   : > { %371 = vmatpush.bf16.msra.mxu1 %v344_v34 }
 0x22a   : > { %487 = vmatmul.msk.bf16.vlgmr.msra.gmra.mxu1 %vm356_vm3, %v349_v35 }
 0x2a7   : > { %v373_v37 = vpop.f32.mrf.mxu1 }
 0x2a8   : > { %v374_v38 = vadd.f32 %v373_v37, %v354_v36 }
 0x2aa   : > { %vm377_vm4 = vcmp.ge.f32.partialorder %v374_v38, 0.0  ;;  %v378_v39 = vmul.f32 0.01, %v374_v38 }
 0x2ac   : > { %v379_v40 = vsel %vm377_vm4, %v374_v38, %v378_v39 }
 0x2ad   : > { %393 = vrot.lane.b32.xlu2 %v379_v40, %s539_s28  ;;  %388 = vrot.lane.b32.xlu1 %v379_v40, %s538_s17  ;;  %381 = vst.msk [vmem:[%s622_s27] sm:$0xff] %vm380_vm5, %v379_v40 }
 0x2ae   : > { %383 = vrot.lane.b32.xlu0 %v379_v40, %s530_s29 }
 0x2af   : > { %v375_v41 = vpop.f32.mrf.mxu1 }
 0x2b5   : > { %408 = vrot.lane.b32.xlu2 %v379_v40, %s540_s22  ;;  %403 = vrot.lane.b32.xlu1 %v379_v40, %s541_s30 }
 0x2b6   : > { %398 = vrot.lane.b32.xlu0 %v379_v40, %s542_s7 }
 0x2be   : > { %413 = vrot.lane.b32.xlu0 %v379_v40, %s543_s8 }
 0x307   : > { %v394_v43 = vpop.permute.xlu2 %393 }
 0x30f   : > { %v409_v47 = vpop.permute.xlu2 %408 }
 0x31f   : > { %v389_v42 = vpop.permute.xlu1 %388 }
 0x320   : > { %v384_v44 = vpop.permute.xlu0 %383 }
 0x321   : > { %387 = vst.msk [vmem:[%s622_s27] sm:$0xff] %vm386_vm6, %v384_v44 }
 0x322   : > { %392 = vst.msk [vmem:[%s622_s27] sm:$0xff] %vm391_vm7, %v389_v42 }
 0x323   : > { %397 = vst.msk [vmem:[%s622_s27] sm:$0xff] %vm396_vm8, %v394_v43 }
 0x327   : > { %v404_v45 = vpop.permute.xlu1 %403 }
 0x328   : > { %v399_v46 = vpop.permute.xlu0 %398 }
 0x329   : > { %402 = vst.msk [vmem:[%s622_s27] sm:$0xff] %vm401_vm9, %v399_v46 }
 0x32a   : > { %407 = vst.msk [vmem:[%s622_s27] sm:$0xff] %vm406_vm10, %v404_v45 }
 0x32b   : > { %412 = vst.msk [vmem:[%s622_s27] sm:$0xff] %vm411_vm11, %v409_v47 }
 0x330   : > { %v414_v48 = vpop.permute.xlu0 %413 }
 0x331   : > { %417 = vst.msk [vmem:[%s622_s27] sm:$0xff] %vm416_vm12, %v414_v48 }
 0x332 PF: > { %s16_s21 = sadd.s32 1, %s526_s21  }
 0x333   : > { %p13_p4 = scmp.ge.s32.totalorder %s16_s21, 4  }
 0x335   :  { %15 = sbr.rel (!%p13_p4) target bundleno = 1 (0x1), region = 74 }

</bundles_post_ra>
